<compile_context>
chip_gen: v7x
topology: tpu7x:2x2x1
jax: 0.10.0
libtpu: 0.0.40
codegen_flags: <defaults>
</compile_context>

<pallas_src>
import jax
import jax.numpy as jnp
from jax import lax
from jax.experimental import pallas as pl
from jax.experimental.pallas import tpu as pltpu


def _onedim_cnn_kernel(x_ref, w1_ref, b1_ref, w2_ref, b2_ref, o_ref,
                       lhs1_ref, lhs2_ref):
    """One grid step: (bt, L, C) channels-last block through conv1 -> conv2.

    Each conv is a single fused matmul:  im2col(x) (bt*L, K*C) @ W (K*C, C).
    The im2col LHS lives in a bf16 VMEM scratch and is (re)built every step
    from statically shifted slices of the input, with explicit zero halo rows
    (so no stale data survives across grid iterations).
    """
    bt, L, C = x_ref.shape

    x = x_ref[...].astype(jnp.bfloat16)
    zrow1 = jnp.zeros((bt, 1, C), jnp.bfloat16)
    zrow2 = jnp.zeros((bt, 2, C), jnp.bfloat16)

    # ---- conv1 (kernel 3, pad 1): lhs1[b, l, k*C + ci] = x[b, l+k-1, ci] ----
    lhs1_ref[:, 0:1, 0:C] = zrow1                       # tap 0 halo
    lhs1_ref[:, 1:L, 0:C] = x[:, 0:L - 1, :]            # tap 0: x[l-1]
    lhs1_ref[:, :, C:2 * C] = x                         # tap 1: x[l]
    lhs1_ref[:, 0:L - 1, 2 * C:3 * C] = x[:, 1:L, :]    # tap 2: x[l+1]
    lhs1_ref[:, L - 1:L, 2 * C:3 * C] = zrow1           # tap 2 halo

    h = jnp.dot(lhs1_ref[...].reshape(bt * L, 3 * C), w1_ref[...],
                preferred_element_type=jnp.float32)
    h = (h + b1_ref[...]).reshape(bt, L, C).astype(jnp.bfloat16)

    # ---- conv2 (kernel 5, pad 2): lhs2[b, l, k*C + ci] = h[b, l+k-2, ci] ----
    lhs2_ref[:, 0:2, 0:C] = zrow2                       # tap 0 halo
    lhs2_ref[:, 2:L, 0:C] = h[:, 0:L - 2, :]            # tap 0: h[l-2]
    lhs2_ref[:, 0:1, C:2 * C] = zrow1                   # tap 1 halo
    lhs2_ref[:, 1:L, C:2 * C] = h[:, 0:L - 1, :]        # tap 1: h[l-1]
    lhs2_ref[:, :, 2 * C:3 * C] = h                     # tap 2: h[l]
    lhs2_ref[:, 0:L - 1, 3 * C:4 * C] = h[:, 1:L, :]    # tap 3: h[l+1]
    lhs2_ref[:, L - 1:L, 3 * C:4 * C] = zrow1           # tap 3 halo
    lhs2_ref[:, 0:L - 2, 4 * C:5 * C] = h[:, 2:L, :]    # tap 4: h[l+2]
    lhs2_ref[:, L - 2:L, 4 * C:5 * C] = zrow2           # tap 4 halo

    y = jnp.dot(lhs2_ref[...].reshape(bt * L, 5 * C), w2_ref[...],
                preferred_element_type=jnp.float32)
    y = y + b2_ref[...]

    # nn.Dropout == identity in eval mode.
    o_ref[...] = y.reshape(bt, L, C).astype(o_ref.dtype)


def prepare_params(w1, b1, w2, b2):
    """Repack PyTorch Conv1d params ONCE (hoisted out of the forward call).

    w1: (C, C, 3), w2: (C, C, 5) in PyTorch (C_out, C_in, K) layout.
    Returns fused bf16 matmul weights (K*C_in, C_out) and (1, C) f32 biases.
    """
    C = w1.shape[0]
    w1f = jnp.transpose(w1, (2, 1, 0)).reshape(3 * C, C).astype(jnp.bfloat16)
    w2f = jnp.transpose(w2, (2, 1, 0)).reshape(5 * C, C).astype(jnp.bfloat16)
    b1r = jnp.asarray(b1, jnp.float32).reshape(1, C)
    b2r = jnp.asarray(b2, jnp.float32).reshape(1, C)
    return w1f, b1r, w2f, b2r


def _vmem_budgets():
    """(tile budget, vmem_limit_bytes) per TPU generation."""
    try:
        kind = jax.devices()[0].device_kind.lower()
    except Exception:
        kind = ""
    if "v7" in kind:   # 64 MiB VMEM per TensorCore: leave pipeline headroom.
        return 40 * 1024 * 1024, 48 * 1024 * 1024
    # v5e / v6e: 128 MiB physical VMEM; raise well above the scoped default.
    return 80 * 1024 * 1024, 100 * 1024 * 1024


def _pick_batch_tile(B, L, C, tile_budget):
    # Resident bytes per batch row of one tile: double-buffered f32 x & out
    # blocks, bf16 im2col scratches (3C and 5C wide), ~4 full-tile f32 temps.
    per_row = L * C * (2 * 4 + 2 * 4 + 3 * 2 + 5 * 2 + 4 * 4)
    # Double-buffered bf16 fused weights + f32 biases are resident too.
    weight_bytes = 2 * (8 * C * C * 2 + 2 * C * 4)
    cap = max(1, int((tile_budget - weight_bytes) // per_row))
    fitting = [d for d in range(1, B + 1) if B % d == 0 and d <= cap]
    bt = max(fitting) if fitting else 1
    # Keep >= 2 grid steps when B allows so dimension_semantics=("parallel",)
    # can shard the batch axis across both v7x TensorCores.
    if bt == B and B > 1:
        proper = [d for d in fitting if d < B]
        if proper:
            bt = max(proper)
    return bt


def onedim_cnn(x, w1f, b1r, w2f, b2r, *, batch_tile=None):
    """x: (B, L, C) channels-last; (w1f, b1r, w2f, b2r) from prepare_params()."""
    B, L, C = x.shape
    assert L >= 5, "kernel assumes seq_len >= conv2 kernel size (5)"

    tile_budget, vmem_limit = _vmem_budgets()
    bt = batch_tile if batch_tile is not None else _pick_batch_tile(B, L, C, tile_budget)
    assert B % bt == 0, "batch_tile must divide B"

    # TODO(synk): the w/b BlockSpecs are constant across the grid; single-
    # buffer them (pipeline_mode=pl.Buffered(1)) once supported for the
    # top-level pallas_call pipeline, reclaiming the duplicate weight VMEM.
    # TODO(synk): for d_model < 128 (demo C=32) the final store is a masked
    # 32-lane vst; a lane-dense (bt, L*C) output slab would require an
    # in-kernel sublane->lane relayout, so it is not done here (for real
    # transformer d_model >= 128 the store is already lane-dense).
    return pl.pallas_call(
        _onedim_cnn_kernel,
        out_shape=jax.ShapeDtypeStruct((B, L, C), x.dtype),
        grid_spec=pltpu.PrefetchScalarGridSpec(
            num_scalar_prefetch=0,
            grid=(B // bt,),
            in_specs=[
                pl.BlockSpec((bt, L, C), lambda b: (b, 0, 0)),    # x tile
                pl.BlockSpec((3 * C, C), lambda b: (0, 0)),       # conv1 fused W
                pl.BlockSpec((1, C), lambda b: (0, 0)),           # conv1 bias
                pl.BlockSpec((5 * C, C), lambda b: (0, 0)),       # conv2 fused W
                pl.BlockSpec((1, C), lambda b: (0, 0)),           # conv2 bias
            ],
            out_specs=pl.BlockSpec((bt, L, C), lambda b: (b, 0, 0)),
            scratch_shapes=[
                pltpu.VMEM((bt, L, 3 * C), jnp.bfloat16),   # conv1 im2col LHS
                pltpu.VMEM((bt, L, 5 * C), jnp.bfloat16),   # conv2 im2col LHS
            ],
        ),
        compiler_params=pltpu.CompilerParams(
            dimension_semantics=("parallel",),
            vmem_limit_bytes=vmem_limit),
    )(x, w1f, b1r, w2f, b2r)


def _reference(x, w1, b1, w2, b2):
    """Pure-JAX f32 reference matching the PyTorch forward (eval mode)."""
    xt = jnp.transpose(x, (0, 2, 1))  # (B, C, L) == NCW
    dn = ("NCH", "OIH", "NCH")
    h = lax.conv_general_dilated(xt, w1, window_strides=(1,),
                                 padding=[(1, 1)], dimension_numbers=dn)
    h = h + b1[None, :, None]
    y = lax.conv_general_dilated(h, w2, window_strides=(1,),
                                 padding=[(2, 2)], dimension_numbers=dn)
    y = y + b2[None, :, None]
    return jnp.transpose(y, (0, 2, 1))


if __name__ == "__main__":
    B, L, D = 2, 16, 32  # batch, seq len, d_model

    key = jax.random.PRNGKey(0)
    kx, k1, k2, k3, k4 = jax.random.split(key, 5)

    x = jax.random.normal(kx, (B, L, D), dtype=jnp.float32)
    # Deterministic synthetic parameters with PyTorch Conv1d shapes.
    w1 = jax.random.normal(k1, (D, D, 3), dtype=jnp.float32) * 0.05
    b1 = jax.random.normal(k2, (D,), dtype=jnp.float32) * 0.05
    w2 = jax.random.normal(k3, (D, D, 5), dtype=jnp.float32) * 0.05
    b2 = jax.random.normal(k4, (D,), dtype=jnp.float32) * 0.05

    # Weight repack is hoisted: runs once, outside the (jitted) forward.
    params = prepare_params(w1, b1, w2, b2)

    out = jax.jit(onedim_cnn)(x, *params)
    out = jax.block_until_ready(out)

    ref = _reference(x, w1, b1, w2, b2)
    assert out.shape == (B, L, D)
    # bf16 MXU inputs (f32 accumulation) vs. an all-f32 reference: tolerance
    # sized for bf16 input rounding at these magnitudes.
    assert jnp.allclose(out, ref, atol=5e-2, rtol=5e-2), "mismatch vs reference"

    print("KERNEL_OK")
</pallas_src>

<mosaic_0001>
module attributes {stable_mosaic.version = 11 : i64} {
  func.func @_onedim_cnn_kernel(%arg0: i32, %arg1: memref<1x16x32xf32, #tpu.memory_space<vmem>>, %arg2: memref<96x32xbf16, #tpu.memory_space<vmem>>, %arg3: memref<1x32xf32, #tpu.memory_space<vmem>>, %arg4: memref<160x32xbf16, #tpu.memory_space<vmem>>, %arg5: memref<1x32xf32, #tpu.memory_space<vmem>>, %arg6: memref<1x16x32xf32, #tpu.memory_space<vmem>>, %arg7: memref<1x16x96xbf16, #tpu.memory_space<vmem>>, %arg8: memref<1x16x160xbf16, #tpu.memory_space<vmem>>) attributes {dimension_semantics = [#tpu.dimension_semantics<parallel>], iteration_bounds = array<i64: 2>, scalar_prefetch = 0 : i64, scratch_operands = 2 : i64, tpu.core_type = #tpu.core_type<tc>, window_params = [{transform_indices = @transform_0, window_bounds = array<i64: 1, 16, 32>}, {pipeline_mode = #tpu.pipeline_mode<synchronous>, transform_indices = @transform_1, window_bounds = array<i64: 96, 32>}, {pipeline_mode = #tpu.pipeline_mode<synchronous>, transform_indices = @transform_2, window_bounds = array<i64: 1, 32>}, {pipeline_mode = #tpu.pipeline_mode<synchronous>, transform_indices = @transform_3, window_bounds = array<i64: 160, 32>}, {pipeline_mode = #tpu.pipeline_mode<synchronous>, transform_indices = @transform_4, window_bounds = array<i64: 1, 32>}, {transform_indices = @transform_5, window_bounds = array<i64: 1, 16, 32>}]} {
    %c0 = arith.constant 0 : index
    %c0_0 = arith.constant 0 : index
    %c0_1 = arith.constant 0 : index
    %0 = vector.load %arg1[%c0, %c0_0, %c0_1] : memref<1x16x32xf32, #tpu.memory_space<vmem>>, vector<1x16x32xf32>
    %1 = arith.truncf %0 : vector<1x16x32xf32> to vector<1x16x32xbf16>
    %cst = arith.constant 0.000000e+00 : bf16
    %2 = vector.broadcast %cst : bf16 to vector<1x1x32xbf16>
    %cst_2 = arith.constant 0.000000e+00 : bf16
    %3 = vector.broadcast %cst_2 : bf16 to vector<1x2x32xbf16>
    %c0_3 = arith.constant 0 : index
    %c0_4 = arith.constant 0 : index
    %c0_5 = arith.constant 0 : index
    %4 = vector.load %arg7[%c0_3, %c0_4, %c0_5] : memref<1x16x96xbf16, #tpu.memory_space<vmem>>, vector<1x1x32xbf16>
    tpu.vector_store %arg7[%c0_3, %c0_4, %c0_5], %2 {strides = array<i32>} : memref<1x16x96xbf16, #tpu.memory_space<vmem>>, vector<1x1x32xbf16>,
    %5 = vector.extract_strided_slice %1 {offsets = [0, 0, 0], sizes = [1, 15, 32], strides = [1, 1, 1]} : vector<1x16x32xbf16> to vector<1x15x32xbf16>
    %c0_6 = arith.constant 0 : index
    %c1 = arith.constant 1 : index
    %c0_7 = arith.constant 0 : index
    %6 = vector.load %arg7[%c0_6, %c1, %c0_7] : memref<1x16x96xbf16, #tpu.memory_space<vmem>>, vector<1x15x32xbf16>
    tpu.vector_store %arg7[%c0_6, %c1, %c0_7], %5 {strides = array<i32>} : memref<1x16x96xbf16, #tpu.memory_space<vmem>>, vector<1x15x32xbf16>,
    %c0_8 = arith.constant 0 : index
    %c0_9 = arith.constant 0 : index
    %c32 = arith.constant 32 : index
    %7 = vector.load %arg7[%c0_8, %c0_9, %c32] : memref<1x16x96xbf16, #tpu.memory_space<vmem>>, vector<1x16x32xbf16>
    tpu.vector_store %arg7[%c0_8, %c0_9, %c32], %1 {strides = array<i32>} : memref<1x16x96xbf16, #tpu.memory_space<vmem>>, vector<1x16x32xbf16>,
    %8 = vector.extract_strided_slice %1 {offsets = [0, 1, 0], sizes = [1, 15, 32], strides = [1, 1, 1]} : vector<1x16x32xbf16> to vector<1x15x32xbf16>
    %c0_10 = arith.constant 0 : index
    %c0_11 = arith.constant 0 : index
    %c64 = arith.constant 64 : index
    %9 = vector.load %arg7[%c0_10, %c0_11, %c64] : memref<1x16x96xbf16, #tpu.memory_space<vmem>>, vector<1x15x32xbf16>
    tpu.vector_store %arg7[%c0_10, %c0_11, %c64], %8 {strides = array<i32>} : memref<1x16x96xbf16, #tpu.memory_space<vmem>>, vector<1x15x32xbf16>,
    %c0_12 = arith.constant 0 : index
    %c15 = arith.constant 15 : index
    %c64_13 = arith.constant 64 : index
    %10 = vector.load %arg7[%c0_12, %c15, %c64_13] : memref<1x16x96xbf16, #tpu.memory_space<vmem>>, vector<1x1x32xbf16>
    tpu.vector_store %arg7[%c0_12, %c15, %c64_13], %2 {strides = array<i32>} : memref<1x16x96xbf16, #tpu.memory_space<vmem>>, vector<1x1x32xbf16>,
    %c0_14 = arith.constant 0 : index
    %c0_15 = arith.constant 0 : index
    %c0_16 = arith.constant 0 : index
    %11 = vector.load %arg7[%c0_14, %c0_15, %c0_16] : memref<1x16x96xbf16, #tpu.memory_space<vmem>>, vector<1x16x96xbf16>
    %12 = vector.shape_cast %11 : vector<1x16x96xbf16> to vector<16x96xbf16>
    %c0_17 = arith.constant 0 : index
    %c0_18 = arith.constant 0 : index
    %13 = vector.load %arg2[%c0_17, %c0_18] : memref<96x32xbf16, #tpu.memory_space<vmem>>, vector<96x32xbf16>
    %cst_19 = arith.constant dense<0.000000e+00> : vector<16x32xf32>
    %14 = tpu.matmul %12, %13, %cst_19 {dimension_numbers = #tpu.dot_dimension_numbers<[1], [0], [0], [1], [0, 0, 1, 1], [], []>} : vector<16x96xbf16>, vector<96x32xbf16>, vector<16x32xf32> -> vector<16x32xf32>
    %c0_20 = arith.constant 0 : index
    %c0_21 = arith.constant 0 : index
    %15 = vector.load %arg3[%c0_20, %c0_21] : memref<1x32xf32, #tpu.memory_space<vmem>>, vector<1x32xf32>
    %16 = vector.broadcast %15 : vector<1x32xf32> to vector<16x32xf32>
    %17 = arith.addf %14, %16 : vector<16x32xf32>
    %18 = vector.shape_cast %17 : vector<16x32xf32> to vector<1x16x32xf32>
    %19 = arith.truncf %18 : vector<1x16x32xf32> to vector<1x16x32xbf16>
    %c0_22 = arith.constant 0 : index
    %c0_23 = arith.constant 0 : index
    %c0_24 = arith.constant 0 : index
    %20 = vector.load %arg8[%c0_22, %c0_23, %c0_24] : memref<1x16x160xbf16, #tpu.memory_space<vmem>>, vector<1x2x32xbf16>
    tpu.vector_store %arg8[%c0_22, %c0_23, %c0_24], %3 {strides = array<i32>} : memref<1x16x160xbf16, #tpu.memory_space<vmem>>, vector<1x2x32xbf16>,
    %21 = vector.extract_strided_slice %19 {offsets = [0, 0, 0], sizes = [1, 14, 32], strides = [1, 1, 1]} : vector<1x16x32xbf16> to vector<1x14x32xbf16>
    %c0_25 = arith.constant 0 : index
    %c2 = arith.constant 2 : index
    %c0_26 = arith.constant 0 : index
    %22 = vector.load %arg8[%c0_25, %c2, %c0_26] : memref<1x16x160xbf16, #tpu.memory_space<vmem>>, vector<1x14x32xbf16>
    tpu.vector_store %arg8[%c0_25, %c2, %c0_26], %21 {strides = array<i32>} : memref<1x16x160xbf16, #tpu.memory_space<vmem>>, vector<1x14x32xbf16>,
    %c0_27 = arith.constant 0 : index
    %c0_28 = arith.constant 0 : index
    %c32_29 = arith.constant 32 : index
    %23 = vector.load %arg8[%c0_27, %c0_28, %c32_29] : memref<1x16x160xbf16, #tpu.memory_space<vmem>>, vector<1x1x32xbf16>
    tpu.vector_store %arg8[%c0_27, %c0_28, %c32_29], %2 {strides = array<i32>} : memref<1x16x160xbf16, #tpu.memory_space<vmem>>, vector<1x1x32xbf16>,
    %24 = vector.extract_strided_slice %19 {offsets = [0, 0, 0], sizes = [1, 15, 32], strides = [1, 1, 1]} : vector<1x16x32xbf16> to vector<1x15x32xbf16>
    %c0_30 = arith.constant 0 : index
    %c1_31 = arith.constant 1 : index
    %c32_32 = arith.constant 32 : index
    %25 = vector.load %arg8[%c0_30, %c1_31, %c32_32] : memref<1x16x160xbf16, #tpu.memory_space<vmem>>, vector<1x15x32xbf16>
    tpu.vector_store %arg8[%c0_30, %c1_31, %c32_32], %24 {strides = array<i32>} : memref<1x16x160xbf16, #tpu.memory_space<vmem>>, vector<1x15x32xbf16>,
    %c0_33 = arith.constant 0 : index
    %c0_34 = arith.constant 0 : index
    %c64_35 = arith.constant 64 : index
    %26 = vector.load %arg8[%c0_33, %c0_34, %c64_35] : memref<1x16x160xbf16, #tpu.memory_space<vmem>>, vector<1x16x32xbf16>
    tpu.vector_store %arg8[%c0_33, %c0_34, %c64_35], %19 {strides = array<i32>} : memref<1x16x160xbf16, #tpu.memory_space<vmem>>, vector<1x16x32xbf16>,
    %27 = vector.extract_strided_slice %19 {offsets = [0, 1, 0], sizes = [1, 15, 32], strides = [1, 1, 1]} : vector<1x16x32xbf16> to vector<1x15x32xbf16>
    %c0_36 = arith.constant 0 : index
    %c0_37 = arith.constant 0 : index
    %c96 = arith.constant 96 : index
    %28 = vector.load %arg8[%c0_36, %c0_37, %c96] : memref<1x16x160xbf16, #tpu.memory_space<vmem>>, vector<1x15x32xbf16>
    tpu.vector_store %arg8[%c0_36, %c0_37, %c96], %27 {strides = array<i32>} : memref<1x16x160xbf16, #tpu.memory_space<vmem>>, vector<1x15x32xbf16>,
    %c0_38 = arith.constant 0 : index
    %c15_39 = arith.constant 15 : index
    %c96_40 = arith.constant 96 : index
    %29 = vector.load %arg8[%c0_38, %c15_39, %c96_40] : memref<1x16x160xbf16, #tpu.memory_space<vmem>>, vector<1x1x32xbf16>
    tpu.vector_store %arg8[%c0_38, %c15_39, %c96_40], %2 {strides = array<i32>} : memref<1x16x160xbf16, #tpu.memory_space<vmem>>, vector<1x1x32xbf16>,
    %30 = vector.extract_strided_slice %19 {offsets = [0, 2, 0], sizes = [1, 14, 32], strides = [1, 1, 1]} : vector<1x16x32xbf16> to vector<1x14x32xbf16>
    %c0_41 = arith.constant 0 : index
    %c0_42 = arith.constant 0 : index
    %c128 = arith.constant 128 : index
    %31 = vector.load %arg8[%c0_41, %c0_42, %c128] : memref<1x16x160xbf16, #tpu.memory_space<vmem>>, vector<1x14x32xbf16>
    tpu.vector_store %arg8[%c0_41, %c0_42, %c128], %30 {strides = array<i32>} : memref<1x16x160xbf16, #tpu.memory_space<vmem>>, vector<1x14x32xbf16>,
    %c0_43 = arith.constant 0 : index
    %c14 = arith.constant 14 : index
    %c128_44 = arith.constant 128 : index
    %32 = vector.load %arg8[%c0_43, %c14, %c128_44] : memref<1x16x160xbf16, #tpu.memory_space<vmem>>, vector<1x2x32xbf16>
    tpu.vector_store %arg8[%c0_43, %c14, %c128_44], %3 {strides = array<i32>} : memref<1x16x160xbf16, #tpu.memory_space<vmem>>, vector<1x2x32xbf16>,
    %c0_45 = arith.constant 0 : index
    %c0_46 = arith.constant 0 : index
    %c0_47 = arith.constant 0 : index
    %33 = vector.load %arg8[%c0_45, %c0_46, %c0_47] : memref<1x16x160xbf16, #tpu.memory_space<vmem>>, vector<1x16x160xbf16>
    %34 = vector.shape_cast %33 : vector<1x16x160xbf16> to vector<16x160xbf16>
    %c0_48 = arith.constant 0 : index
    %c0_49 = arith.constant 0 : index
    %35 = vector.load %arg4[%c0_48, %c0_49] : memref<160x32xbf16, #tpu.memory_space<vmem>>, vector<160x32xbf16>
    %cst_50 = arith.constant dense<0.000000e+00> : vector<16x32xf32>
    %36 = tpu.matmul %34, %35, %cst_50 {dimension_numbers = #tpu.dot_dimension_numbers<[1], [0], [0], [1], [0, 0, 1, 1], [], []>} : vector<16x160xbf16>, vector<160x32xbf16>, vector<16x32xf32> -> vector<16x32xf32>
    %c0_51 = arith.constant 0 : index
    %c0_52 = arith.constant 0 : index
    %37 = vector.load %arg5[%c0_51, %c0_52] : memref<1x32xf32, #tpu.memory_space<vmem>>, vector<1x32xf32>
    %38 = vector.broadcast %37 : vector<1x32xf32> to vector<16x32xf32>
    %39 = arith.addf %36, %38 : vector<16x32xf32>
    %40 = vector.shape_cast %39 : vector<16x32xf32> to vector<1x16x32xf32>
    %c0_53 = arith.constant 0 : index
    %c0_54 = arith.constant 0 : index
    %c0_55 = arith.constant 0 : index
    %41 = vector.load %arg6[%c0_53, %c0_54, %c0_55] : memref<1x16x32xf32, #tpu.memory_space<vmem>>, vector<1x16x32xf32>
    tpu.vector_store %arg6[%c0_53, %c0_54, %c0_55], %40 {strides = array<i32>} : memref<1x16x32xf32, #tpu.memory_space<vmem>>, vector<1x16x32xf32>,
    return
  }
  func.func @transform_0(%arg0: i32) -> (i32, i32, i32) {
    %c0_i32 = arith.constant 0 : i32
    %c0_i32_0 = arith.constant 0 : i32
    %c0_i32_1 = arith.constant 0 : i32
    return %arg0, %c0_i32, %c0_i32_0 : i32, i32, i32
  }
  func.func @transform_1(%arg0: i32) -> (i32, i32) {
    %c0_i32 = arith.constant 0 : i32
    %c0_i32_0 = arith.constant 0 : i32
    %c0_i32_1 = arith.constant 0 : i32
    return %c0_i32, %c0_i32_0 : i32, i32
  }
  func.func @transform_2(%arg0: i32) -> (i32, i32) {
    %c0_i32 = arith.constant 0 : i32
    %c0_i32_0 = arith.constant 0 : i32
    %c0_i32_1 = arith.constant 0 : i32
    return %c0_i32, %c0_i32_0 : i32, i32
  }
  func.func @transform_3(%arg0: i32) -> (i32, i32) {
    %c0_i32 = arith.constant 0 : i32
    %c0_i32_0 = arith.constant 0 : i32
    %c0_i32_1 = arith.constant 0 : i32
    return %c0_i32, %c0_i32_0 : i32, i32
  }
  func.func @transform_4(%arg0: i32) -> (i32, i32) {
    %c0_i32 = arith.constant 0 : i32
    %c0_i32_0 = arith.constant 0 : i32
    %c0_i32_1 = arith.constant 0 : i32
    return %c0_i32, %c0_i32_0 : i32, i32
  }
  func.func @transform_5(%arg0: i32) -> (i32, i32, i32) {
    %c0_i32 = arith.constant 0 : i32
    %c0_i32_0 = arith.constant 0 : i32
    %c0_i32_1 = arith.constant 0 : i32
    return %arg0, %c0_i32, %c0_i32_0 : i32, i32, i32
  }
}

</mosaic_0001>

<bundles_post_ra>
// kernel: onedim_cnn.1
= control target key start
LH: loop header
LB: loop body
LE: loop exit
PB: predicated region body
PF: predicated region fallthrough
CT: control target
= control target key end

     0   :  { %10 = vsyncpa [#allocation5], 0  ;;  %s1525_s0 = inlined_call_operand.hbm [shape: f32[2,16,32], index: 0, kind: input, shape index: {}]   ;;  %s1526_s1 = inlined_call_operand.hbm [shape: bf16[96,32], index: 1, kind: input, shape index: {}]   ;;  %s1527_s2 = inlined_call_operand.hbm [shape: f32[1,32], index: 2, kind: input, shape index: {}]   ;;  %s1528_s3 = inlined_call_operand.hbm [shape: bf16[160,32], index: 3, kind: input, shape index: {}]   ;;  %s1529_s4 = inlined_call_operand.hbm [shape: f32[1,32], index: 4, kind: input, shape index: {}]   ;;  %s1530_s5 = inlined_call_operand.hbm [shape: f32[2,16,32], index: 5, kind: output, shape index: {}]  }
   0x1   :  { %12 = vsyncpa [#allocation5 + $0x1], 0 }
   0x2   :  { %13 = vsyncpa [#allocation8], 0 }
   0x3   :  { %14 = vsyncpa [#allocation11], 0 }
   0x4   :  { %15 = vsyncpa [#allocation6], 0 }
   0x5   :  { %17 = vsyncpa [#allocation6 + $0x1], 0  ;;  %s1208_s18 = smov 0   ;;  %s1210_s19 = smov 0  }
   0x6   :  { %s1212_s20 = smov 0   ;;  %s1214_s21 = smov 0  }
   0x7 LB: > { %s1229_s22 = sadd.s32 4294967295, %s1158_s21   ;;  %s760_s23 = sadd.s32 4294967294, %s1158_s21   ;;  %s1158_s21 = sphi %s1214_s21, %s1555_s21   ;;  %s1154_s20 = sphi %s1212_s20, %s1554_s20   ;;  %s1150_s19 = sphi %s1210_s19, %s1553_s19   ;;  %s1146_s18 = sphi %s1208_s18, %s1552_s18  }
   0x8   : > { %p43_p0 = scmp.ne.s32.totalorder %s1150_s19, %s1146_s18  ;;  %p1531_p1 = scmp.eq.s32.totalorder %s1229_s22, 0 }
   0x9   : > { %p157_p3 = scmp.eq.s32.totalorder %s760_s23, 1  ;;  %p761_p5 = scmp.ge.s32.totalorder %s1158_s21, 1 }
   0xa   : > { %p1238_p4 = por %p1531_p1, %p43_p0  ;;  %p164_p7 = scmp.lt.s32.totalorder %s1158_s21, 3 }
   0xb   : > { %p1243_p6 = por %p157_p3, %p43_p0  ;;  %s1160_s27 = smov [#allocation7]  }
   0xc   : > { %s1534_s24 = scalar_select %p1238_p4, 1, 0 }
   0xd   : > { %s1535_s25 = scalar_select %p1243_p6, 1, 0 }
   0xe   : > { %p1248_p8 = pnand %p761_p5, %p164_p7  ;;  %s176_s28 = sshll.u32 %s1160_s27, 4  ;;  %s1252_s28 = int_to_ptr.vmem [resolvable:$true] %s176_s28 }
   0xf   : > { %s1161_s30 = smov [#allocation10]   ;;  %s1162_s7 = smov [#allocation9]  }
  0x10   : > { %s1536_s26 = scalar_select %p1248_p8, 1, 0 }
  0x11   : > { %p847_p9 = pneg %p1248_p8  ;;  %s200_s6 = sshll.u32 %s1161_s30, 4  ;;  %s1263_s6 = int_to_ptr.vmem [resolvable:$true] %s200_s6 }
  0x12   : > { %s1265_s8 = sshll.u32 %s1162_s7, 4  ;;  %s942_s11 = scalar_lea.hbm %s1526_s1, 768  ;;  %s191_s8 = int_to_ptr.vmem [resolvable:$true] %s1265_s8 }
  0x13   : > { %p1259_p11 = pnand %p847_p9, %p1531_p1  ;;  %p943_p12 = scmp.ne.s32.totalorder %s1526_s1, %s942_s11 }
  0x14   : > { %p949_p5 = scmp.lt.u32.totalorder %s942_s11, %s1526_s1 }
  0x15   : > { %p1275_p13 = pneg %p1259_p11 }
  0x17   : > { %p945_p0 = pnand %p1275_p13, %p943_p12 }
  0x19   : > { %p946_p3 = pneg %p945_p0 }
  0x1b   : > { %p951_p7 = pnand %p949_p5, %p946_p3 }
  0x1d   : > { %954 = shalt.err (!%p951_p7)
}
  0x1e   : > { %s955_s17 = scalar_lea.vmem %s1252_s28, 768  ;;  %p963_p2 = scmp.lt.s32.totalorder %s1252_s28, %s1252_s28 }
  0x1f   : > { %p956_p9 = scmp.ne.s32.totalorder %s1252_s28, %s955_s17  ;;  %p964_p6 = scmp.lt.s32.totalorder %s955_s17, %s955_s17 }
  0x21   : > { %p958_p10 = pnand %p956_p9, %p1275_p13  ;;  %p965_p12 = por %p964_p6, %p963_p2 }
  0x23   : > { %p959_p1 = pneg %p958_p10 }
  0x25   : > { %p966_p0 = pnand %p965_p12, %p959_p1 }
  0x27   : > { %969 = shalt.err (!%p966_p0)
}
  0x28   : > { %s1163_s23 = smov 64   ;;  %s1164_s27 = smov 4  }
  0x29   : > { %850 = dma.hbm_to_vmem [thread:$0]  (!%p1259_p11), %s1526_s1, 768, %s1252_s28, [#allocation8], %s1163_s23, %s1163_s23, %s1164_s27  }
  0x2a   : > { %s970_s11 = scalar_lea.hbm %s1528_s3, 1280 }
  0x2b   : > { %p971_p2 = scmp.ne.s32.totalorder %s1528_s3, %s970_s11  ;;  %p977_p10 = scmp.lt.u32.totalorder %s970_s11, %s1528_s3 }
  0x2d   : > { %p973_p1 = pnand %p971_p2, %p1275_p13 }
  0x2f   : > { %p974_p6 = pneg %p973_p1 }
  0x31   : > { %p979_p3 = pnand %p977_p10, %p974_p6 }
  0x33   : > { %982 = shalt.err (!%p979_p3)
}
  0x34   : > { %s983_s28 = scalar_lea.vmem %s1263_s6, 1280  ;;  %p991_p12 = scmp.lt.s32.totalorder %s1263_s6, %s1263_s6 }
  0x35   : > { %p984_p5 = scmp.ne.s32.totalorder %s1263_s6, %s983_s28  ;;  %p992_p0 = scmp.lt.s32.totalorder %s983_s28, %s983_s28 }
  0x37   : > { %p986_p7 = pnand %p984_p5, %p1275_p13  ;;  %p993_p2 = por %p992_p0, %p991_p12 }
  0x39   : > { %p987_p9 = pneg %p986_p7 }
  0x3b   : > { %p994_p1 = pnand %p993_p2, %p987_p9 }
  0x3d   : > { %997 = shalt.err (!%p994_p1)
}
  0x3e   : > { %856 = dma.hbm_to_vmem [thread:$0]  (!%p1259_p11), %s1528_s3, 1280, %s1263_s6, [#allocation11], %s1163_s23, %s1163_s23, %s1164_s27  }
  0x3f   : > { %s998_s10 = scalar_lea.hbm %s1527_s2, 16 }
  0x40   : > { %p999_p6 = scmp.ne.s32.totalorder %s1527_s2, %s998_s10  ;;  %p1005_p5 = scmp.lt.u32.totalorder %s998_s10, %s1527_s2 }
  0x42   : > { %p1001_p10 = pnand %p999_p6, %p1275_p13 }
  0x44   : > { %p1002_p3 = pneg %p1001_p10 }
  0x46   : > { %p1007_p7 = pnand %p1005_p5, %p1002_p3 }
  0x48   : > { %1010 = shalt.err (!%p1007_p7)
}
  0x49   : > { %s1011_s16 = scalar_lea.vmem %s191_s8, 16  ;;  %s1018_s6 = scalar_lea.vmem %s191_s8, 32 }
  0x4a   : > { %p1012_p9 = scmp.ne.s32.totalorder %s191_s8, %s1011_s16  ;;  %p1019_p2 = scmp.lt.s32.totalorder %s191_s8, %s191_s8 }
  0x4b   : > { %p1020_p1 = scmp.lt.s32.totalorder %s1018_s6, %s1011_s16 }
  0x4c   : > { %p1014_p12 = pnand %p1012_p9, %p1275_p13 }
  0x4d   : > { %p1021_p4 = por %p1020_p1, %p1019_p2 }
  0x4e   : > { %p1015_p0 = pneg %p1014_p12 }
  0x50   : > { %p1022_p8 = pnand %p1021_p4, %p1015_p0 }
  0x52   : > { %1025 = shalt.err (!%p1022_p8)
}
  0x53   : > { %853 = dma.hbm_to_vmem [thread:$0]  (!%p1259_p11), %s1527_s2, 16, %s191_s8, [#allocation8]  }
  0x54   : > { %s1165_s28 = smov [#allocation12]   ;;  %s1026_s9 = scalar_lea.hbm %s1529_s4, 16 }
  0x55   : > { %s214_s17 = sshll.u32 %s1165_s28, 4  ;;  %p1027_p6 = scmp.ne.s32.totalorder %s1529_s4, %s1026_s9  ;;  %s215_s17 = int_to_ptr.vmem [resolvable:$true] %s214_s17 }
  0x56   : > { %p1033_p10 = scmp.lt.u32.totalorder %s1026_s9, %s1529_s4 }
  0x57   : > { %p1029_p4 = pnand %p1027_p6, %p1275_p13 }
  0x59   : > { %p1030_p8 = pneg %p1029_p4 }
  0x5b   : > { %p1035_p3 = pnand %p1033_p10, %p1030_p8 }
  0x5d   : > { %1038 = shalt.err (!%p1035_p3)
}
  0x5e   : > { %s1039_s8 = scalar_lea.vmem %s215_s17, 16  ;;  %s1046_s15 = scalar_lea.vmem %s215_s17, 32 }
  0x5f   : > { %p1040_p5 = scmp.ne.s32.totalorder %s215_s17, %s1039_s8  ;;  %p1047_p12 = scmp.lt.s32.totalorder %s215_s17, %s215_s17 }
  0x60   : > { %p1048_p0 = scmp.lt.s32.totalorder %s1046_s15, %s1039_s8 }
  0x61   : > { %p1042_p7 = pnand %p1040_p5, %p1275_p13 }
  0x62   : > { %p1049_p2 = por %p1048_p0, %p1047_p12 }
  0x63   : > { %p1043_p9 = pneg %p1042_p7 }
  0x65   : > { %p1050_p1 = pnand %p1049_p2, %p1043_p9 }
  0x67   : > { %1053 = shalt.err (!%p1050_p1)
}
  0x68   : > { %859 = dma.hbm_to_vmem [thread:$0]  (!%p1259_p11), %s1529_s4, 16, %s215_s17, [#allocation11]  }
  0x69   : > { %s1357_s14 = sadd.s32 1, %s1158_s21   ;;  %s30_s23 = sadd.s32 1, %s1154_s20 }
  0x6a   : > { %s27_s29 = ssub.s32 %s1158_s21, %s1357_s14  ;;  %p37_p13 = scmp.ne.s32.totalorder %s1154_s20, %s1150_s19 }
  0x6b   : > { %p28_p6 = scmp.eq.s32.totalorder %s27_s29, 0  ;;  %p38_p4 = scmp.eq.s32.totalorder %s1158_s21, 0 }
  0x6c   : > { %p1539_p8 = scmp.eq.s32.totalorder %s1229_s22, 1  ;;  %p872_p3 = scmp.lt.s32.totalorder %s1158_s21, 2 }
  0x6d   : > { %s1373_s28 = scalar_select %p28_p6, %s1154_s20, %s30_s23  }
  0x6e   : > { %p1367_p10 = por %p1539_p8, %p37_p13  ;;  %p39_p5 = por %p38_p4, %p37_p13 }
  0x6f   : > { %s225_s30 = sand.u32 1, %s1154_s20   ;;  %s802_s17 = sshll.u32 %s1158_s21, 8 }
  0x70   : > { %s767_s7 = sshll.u32 %s225_s30, 4  ;;  %s1380_s11 = scalar_lea.hbm %s1525_s0, %s802_s17 }
  0x71   : > { %s229_s12 = scalar_lea.vmem [#allocation4], %s767_s7  ;;  %p1384_p11 = pnand %p872_p3, %p39_p5 }
  0x72   : > { %s236_s13 = sshll.u32 %s229_s12, 4  ;;  %s1388_s15 = scalar_lea.sflag [#allocation5], %s225_s30  ;;  %s1382_s13 = int_to_ptr.vmem [resolvable:$true] %s236_s13 }
  0x73   : > { %s1054_s16 = scalar_lea.hbm %s1380_s11, 256  ;;  %p1056_p9 = pneg %p1384_p11 }
  0x74   : > { %p1055_p7 = scmp.ne.s32.totalorder %s1380_s11, %s1054_s16  ;;  %s1059_s29 = scalar_lea.hbm %s1525_s0, 512 }
  0x75   : > { %p1060_p2 = scmp.lt.u32.totalorder %s1380_s11, %s1525_s0  ;;  %p1061_p1 = scmp.lt.u32.totalorder %s1059_s29, %s1054_s16 }
  0x76   : > { %p1057_p12 = pnand %p1056_p9, %p1055_p7  ;;  %p1063_p6 = scmp.lt.u32.totalorder %s1054_s16, %s1380_s11 }
  0x77   : > { %p1062_p13 = por %p1061_p1, %p1060_p2 }
  0x78   : > { %p1058_p0 = pneg %p1057_p12 }
  0x79   : > { %p1064_p4 = por %p1063_p6, %p1062_p13 }
  0x7b   : > { %p1065_p8 = pnand %p1064_p4, %p1058_p0 }
  0x7d   : > { %1068 = shalt.err (!%p1065_p8)
}
  0x7e   : > { %s1069_s30 = scalar_lea.vmem %s1382_s13, 256  ;;  %s1166_s9 = smov [#allocation4]  }
  0x7f   : > { %p1070_p3 = scmp.ne.s32.totalorder %s1382_s13, %s1069_s30  ;;  %s1074_s10 = sshll.u32 %s1166_s9, 4  ;;  %s1075_s10 = int_to_ptr.vmem [resolvable:$false] %s1074_s10 }
  0x80   : > { %s1076_s12 = scalar_lea.vmem %s1075_s10, 512  ;;  %p1077_p12 = scmp.lt.s32.totalorder %s1382_s13, %s1075_s10 }
  0x81   : > { %p1072_p5 = pnand %p1070_p3, %p1056_p9  ;;  %p1078_p2 = scmp.lt.s32.totalorder %s1076_s12, %s1069_s30 }
  0x83   : > { %p1073_p7 = pneg %p1072_p5  ;;  %p1079_p1 = por %p1078_p2, %p1077_p12 }
  0x85   : > { %p1080_p13 = pnand %p1079_p1, %p1073_p7 }
  0x87   : > { %1083 = shalt.err (!%p1080_p13)
}
  0x88   : > { %s1167_s16 = smov 128   ;;  %s1168_s6 = smov 8  }
  0x89   : > { %863 = dma.hbm_to_vmem [thread:$0]  (!%p1384_p11), %s1380_s11, 256, %s1382_s13, %s1388_s15, %s1167_s16, %s1167_s16, %s1168_s6  }
  0x8a   : > { %p1542_p9 = scmp.ne.s32.totalorder %s1536_s26, 0 }
  0x8b   : > { %s1419_s23 = sand.u32 (!%p1542_p9), 1, %s1150_s19   ;;  %p1543_p0 = scmp.ne.s32.totalorder (!%p1542_p9), %s1534_s24, 0 }
  0x8c   : > { %248 = sbr.rel (%p1542_p9) target bundleno = 901 (0x385), region = 40  ;;  %s771_s29 = sshll.u32 (!%p1542_p9), %s1419_s23, 4 }
  0x8d   : > { %s251_s7 = scalar_lea.sflag (!%p1542_p9), [#allocation5], %s1419_s23  ;;  %s254_s17 = scalar_lea.vmem (!%p1542_p9), [#allocation4], %s771_s29 }
  0x93   : > { %1129 = dma.done.wait (%p1543_p0), %s251_s7, 256  }
  0x94   : > { %1131 = vsyncadd (%p1543_p0), %s251_s7, 4294967040  ;;  %p1544_p11 = scmp.eq.s32.totalorder %s1229_s22, 0 }
  0x96   : > { %1133 = dma.done.wait (%p1544_p11), [#allocation8], 784   ;;  %p1545_p6 = pmov %p1544_p11 }
  0x98   : > { %1135 = vsyncadd (%p1545_p6), [#allocation8], 4294966512  ;;  %p1546_p4 = pmov %p1545_p6 }
  0x9a   : > { %1137 = dma.done.wait (%p1546_p4), [#allocation11], 1296   ;;  %p1547_p8 = pmov %p1546_p4 }
  0x9b   : > { %vm301_vm0 = vcmask 253952   ;;  %vm302_vm1 = vsmask.f32 256  ;;  %v1169_v0 = vmov 0   ;;  %vm453_vm2 = vcmask 516352   ;;  %v298_v3 = vld [vmem:[%s254_s17] sm:$0xff] }
  0x9c   : > { %1139 = vsyncadd (%p1547_p8), [#allocation11], 4294966000  ;;  %447 = vst.msk [vmem:[#allocation3] sm:$0x1] %vm301_vm0, %v1169_v0  ;;  %592 = vmatprep.subr.bf16.mxu1 %v1169_v0  ;;  %v1170_v1 = vmov 0.0   ;;  %vm315_vm4 = vcmask 261120  }
  0x9d   : > { %811 = vmatprep.subr.bf16.mxu0 %v1170_v1  ;;  %vm303_vm3 = vmand %vm301_vm0, %vm302_vm1  ;;  %v299_v4 = vld [vmem:[%s254_s17 + $0x8] sm:$0xff]  ;;  %vm316_vm6 = vsmask.f32 7938  ;;  %v926_v8 = vld [vmem:[#allocation7] sm:$0xff]   ;;  %s1171_s24 = smov 32   ;;  %s1172_s26 = smov 64  }
  0x9e   : > { %vm1439_vm5 = vmand %vm453_vm2, %vm302_vm1  ;;  %v304_v5 = vld [vmem:[#allocation2] sm:$0x1]  ;;  %v300_v6 = vpack.c.bf16 %v299_v4, %v298_v3  ;;  %812 = vmatpush3.bf16.msra.mxu0 %v926_v8  ;;  %v928_v18 = vld [vmem:[#allocation7 + $0x10] sm:$0xff]   ;;  %vm1173_vm8 = vmmov 0   ;;  %vm325_vm9 = vcmask 523520   ;;  %vm332_vm10 = vcmask 785920  }
  0x9f   : > { %v305_v7 = vsel %vm303_vm3, 0, %v304_v5  ;;  %v927_v13 = vld [vmem:[#allocation7 + $0x8] sm:$0xff]   ;;  %813 = vmatprep.subr.bf16.mxu0 %v1170_v1  ;;  %vm317_vm7 = vmand %vm315_vm4, %vm316_vm6  ;;  %v929_v20 = vld [vmem:[#allocation7 + $0x18] sm:$0xff]   ;;  %823 = vmatprep.mubr.msk.bf16.mxu0 %vm1173_vm8, %v1170_v1  ;;  %vm333_vm11 = vsmask.f32 7424  ;;  %vm338_vm13 = vcmask 785927  }
  0xa0   : > { %306 = vst [vmem:[#allocation2] sm:$0x1] %v305_v7  ;;  %322 = vrot.lane.b32.xlu0 %v300_v6, %s1171_s24  ;;  %v308_v10 = vshrl.u32 %v300_v6, 16  ;;  %v311_v11 = vshll.u32 %v300_v6, 16  ;;  %v930_v22 = vld [vmem:[#allocation7 + $0x20] sm:$0xff]   ;;  %v931_v23 = vld [vmem:[#allocation7 + $0x28] sm:$0xff]   ;;  %vm334_vm12 = vmand %vm332_vm10, %vm333_vm11 }
  0xa1   : > { %vm339_vm14 = vsmask.f32 7966  ;;  %vm400_vm0 = vcmask 785408   ;;  %vm497_vm1 = vcmask 261127   ;;  %v932_v31 = vld [vmem:[#allocation10] sm:$0xff]   ;;  %v933_v32 = vld [vmem:[#allocation10 + $0x8] sm:$0xff]  }
  0xa2   : > { %v327_v14 = vrot.slane %v311_v11, 1  ;;  %v310_v15 = vrot.slane %v308_v10, 7  ;;  %814 = vmatpush3.bf16.msra.mxu0 %v927_v13  ;;  %vm340_vm15 = vmand %vm338_vm13, %vm339_vm14  ;;  %498 = vst.msk [vmem:[#allocation3 + $0x8] sm:$0x80] %vm497_vm1, %v1169_v0  ;;  %593 = vmatpush1.bf16.msra.mxu1 %v932_v31  ;;  %v934_v33 = vld [vmem:[#allocation10 + $0x10] sm:$0xff]   ;;  %v935_v37 = vld [vmem:[#allocation10 + $0x18] sm:$0xff]  }
  0xa3   : > { %v455_v9 = vld [vmem:[#allocation3] sm:$0x1]  ;;  %815 = vmatprep.subr.bf16.mxu0 %v1170_v1  ;;  %594 = vmatprep.subr.bf16.mxu1 %v1169_v0  ;;  %v936_v43 = vld [vmem:[#allocation10 + $0x20] sm:$0xff]   ;;  %vm451_vm2 = vcmask 261121   ;;  %vm495_vm3 = vcmask 260096   ;;  %v937_v50 = vld [vmem:[#allocation10 + $0x28] sm:$0xff]  }
  0xa4   : > { %v456_v12 = vsel %vm1439_vm5, 0, %v455_v9  ;;  %v328_v16 = vor.u32 %v327_v14, %v308_v10  ;;  %v313_v17 = vor.u32 %v311_v11, %v310_v15  ;;  %v777_v34 = vld [vmem:[#allocation9] ss:$0 sm:$0xff]  ;;  %s1174_s11 = smov 96   ;;  %v938_v53 = vld [vmem:[#allocation10 + $0x30] sm:$0xff]   ;;  %v940_v56 = vld [vmem:[#allocation10 + $0x40] sm:$0xff]  }
  0xa5   : > { %457 = vst [vmem:[#allocation3] sm:$0x1] %v456_v12  ;;  %v939_v55 = vld [vmem:[#allocation10 + $0x38] sm:$0xff]   ;;  %v941_v57 = vld [vmem:[#allocation10 + $0x48] sm:$0xff]   ;;  %vm469_vm5 = vmand %vm325_vm9, %vm316_vm6  ;;  %s296_s13 = scalar_lea.vmem [#allocation13], %s771_s29  ;;  %s803_s15 = sshll.u32 %s1229_s22, 8 }
  0xa6   : > { %329 = vrot.lane.b32.xlu0 %v328_v16, %s1172_s26  ;;  %816 = vmatpush3.bf16.msra.mxu0 %v928_v18  ;;  %v785_v4 = vld [vmem:[#allocation12] ss:$0 sm:$0xff]  ;;  %s649_s8 = sshll.u32 %s296_s13, 4  ;;  %s1479_s10 = scalar_lea.hbm %s1530_s5, %s803_s15  ;;  %s1474_s8 = int_to_ptr.vmem [resolvable:$true] %s649_s8 }
  0xa7   : > { %v318_v19 = vld [vmem:[#allocation2] sm:$0xff]  ;;  %817 = vmatprep.subr.bf16.mxu0 %v1170_v1  ;;  %595 = vmatpush1.bf16.msra.mxu1 %v933_v32  ;;  %s636_s22 = scalar_lea.sflag [#allocation6], %s1419_s23  ;;  %s1084_s12 = scalar_lea.vmem %s1474_s8, 256 }
  0xa8   : > { %v319_v21 = vsel %vm317_vm7, %v313_v17, %v318_v19  ;;  %596 = vmatprep.subr.bf16.mxu1 %v1169_v0  ;;  %vm483_vm7 = vcmask 1048320   ;;  %p1085_p3 = scmp.ne.s32.totalorder %s1474_s8, %s1084_s12  ;;  %s1175_s16 = smov [#allocation13]  }
  0xa9   : > { %320 = vst [vmem:[#allocation2] sm:$0xff] %v319_v21  ;;  %vm484_vm8 = vmand %vm483_vm7, %vm333_vm11  ;;  %s1088_s6 = sshll.u32 %s1175_s16, 4  ;;  %s1089_s6 = int_to_ptr.vmem [resolvable:$false] %s1088_s6 }
  0xaa   : > { %818 = vmatpush3.bf16.msra.mxu0 %v929_v20  ;;  %p1086_p5 = pnand %p1085_p3, %p1367_p10  ;;  %s1090_s29 = scalar_lea.vmem %s1089_s6, 512 }
  0xab   : > { %819 = vmatprep.subr.bf16.mxu0 %v1170_v1  ;;  %597 = vmatpush1.bf16.msra.mxu1 %v934_v33  ;;  %p1091_p12 = scmp.lt.s32.totalorder %s1474_s8, %s1089_s6  ;;  %p1092_p2 = scmp.lt.s32.totalorder %s1090_s29, %s1084_s12 }
  0xac   : > { %598 = vmatprep.subr.bf16.mxu1 %v1169_v0  ;;  %p1087_p7 = pneg %p1086_p5 }
  0xad   : > { %p1093_p1 = por %p1092_p2, %p1091_p12 }
  0xae   : > { %820 = vmatpush3.bf16.msra.mxu0 %v930_v22 }
  0xaf   : > { %821 = vmatprep.subr.bf16.mxu0 %v1170_v1  ;;  %599 = vmatpush1.bf16.msra.mxu1 %v935_v37  ;;  %p1094_p13 = pnand %p1093_p1, %p1087_p7 }
  0xb0   : > { %600 = vmatprep.subr.bf16.mxu1 %v1169_v0 }
  0xb2   : > { %822 = vmatpush3.bf16.msra.mxu0 %v931_v23 }
  0xb3   : > { %601 = vmatpush1.bf16.msra.mxu1 %v936_v43 }
  0xb4   : > { %602 = vmatprep.subr.bf16.mxu1 %v1169_v0 }
  0xb7   : > { %603 = vmatpush1.bf16.msra.mxu1 %v937_v50 }
  0xb8   : > { %604 = vmatprep.subr.bf16.mxu1 %v1169_v0 }
  0xbb   : > { %605 = vmatpush1.bf16.msra.mxu1 %v938_v53 }
  0xbc   : > { %606 = vmatprep.subr.bf16.mxu1 %v1169_v0 }
  0xbf   : > { %607 = vmatpush1.bf16.msra.mxu1 %v939_v55 }
  0xc0   : > { %608 = vmatprep.subr.bf16.mxu1 %v1169_v0 }
  0xc3   : > { %609 = vmatpush1.bf16.msra.mxu1 %v940_v56 }
  0xc4   : > { %610 = vmatprep.subr.bf16.mxu1 %v1169_v0 }
  0xc7   : > { %611 = vmatpush1.bf16.msra.mxu1 %v941_v57 }
 0x112   : > { %v323_v24 = vpop.permute.xlu0 %322 }
 0x113   : > { %326 = vst.msk [vmem:[#allocation2] sm:$0xff] %vm325_vm9, %v323_v24 }
 0x118   : > { %v330_v25 = vpop.permute.xlu0 %329 }
 0x11a   : > { %v335_v26 = vld [vmem:[#allocation2] sm:$0xff] }
 0x11b   : > { %v336_v27 = vsel %vm334_vm12, %v330_v25, %v335_v26  ;;  %vm488_vm12 = vcmask 1048327  }
 0x11c   : > { %337 = vst [vmem:[#allocation2] sm:$0xff] %v336_v27  ;;  %vm489_vm13 = vmand %vm488_vm12, %vm339_vm14 }
 0x123   : > { %v341_v28 = vld [vmem:[#allocation2] sm:$0x80] }
 0x124   : > { %v342_v29 = vsel %vm340_vm15, 0, %v341_v28 }
 0x125   : > { %343 = vst [vmem:[#allocation2] sm:$0x80] %v342_v29 }
 0x12c   : > { %v344_v30 = vld [vmem:[#allocation2] sm:$0xff] }
 0x12d   : > { %824 = vmatmul.mubr.msk.bf16.vlgmr.msra.gmra.mrb[0].mxu0 %vm400_vm0, %v344_v30 }
 0x200   : > { %v438_v35 = vpop.f32.mrb[0].mxu0 }
 0x201   : > { %v825_v36 = vpop.f32.mrb[1].mxu0  ;;  %v439_v39 = vadd.f32 %v777_v34, %v438_v35 }
 0x202   : > { %v441_v38 = vpop.f32.mrb[2].mxu0 }
 0x203   : > { %v442_v40 = vadd.f32 %v777_v34, %v441_v38  ;;  %v826_v41 = vpop.f32.mrb[3].mxu0 }
 0x205   : > { %v445_v42 = vpack.c.bf16 %v442_v40, %v439_v39 }
 0x207   : > { %v449_v44 = vrot.slane %v445_v42, 7  ;;  %v493_v45 = vrot.slane %v445_v42, 1  ;;  %v459_v46 = vshrl.u32 %v445_v42, 16  ;;  %v462_v47 = vshll.u32 %v445_v42, 16 }
 0x209   : > { %452 = vst.msk [vmem:[#allocation3] sm:$0xfe] %vm451_vm2, %v449_v44  ;;  %v478_v48 = vrot.slane %v462_v47, 1  ;;  %v461_v49 = vrot.slane %v459_v46, 7 }
 0x20a   : > { %496 = vst.msk [vmem:[#allocation3 + $0x8] sm:$0x7f] %vm495_vm3, %v493_v45 }
 0x20b   : > { %v479_v51 = vor.u32 %v478_v48, %v459_v46  ;;  %v464_v52 = vor.u32 %v462_v47, %v461_v49 }
 0x20d   : > { %480 = vrot.lane.b32.xlu0 %v479_v51, %s1174_s11  ;;  %465 = vrot.lane.b32.xlu1 %v464_v52, %s1171_s24 }
 0x210   : > { %v470_v59 = vld [vmem:[#allocation3] sm:$0xff] }
 0x211   : > { %v500_v54 = vld [vmem:[#allocation3 + $0x8] sm:$0xff]  ;;  %473 = vrot.lane.b32.xlu1 %v445_v42, %s1172_s26 }
 0x212   : > { %796 = vmatprep.mubr.msk.bf16.mxu1 %vm315_vm4, %v500_v54 }
 0x27f   : > { %v466_v58 = vpop.permute.xlu1 %465  ;;  %v481_v62 = vpop.permute.xlu0 %480 }
 0x280   : > { %v471_v60 = vsel %vm469_vm5, %v466_v58, %v470_v59 }
 0x281   : > { %472 = vst [vmem:[#allocation3] sm:$0xff] %v471_v60 }
 0x283   : > { %v474_v61 = vpop.permute.xlu1 %473 }
 0x284   : > { %477 = vst.msk [vmem:[#allocation3] sm:$0xff] %vm332_vm10, %v474_v61 }
 0x28b   : > { %v485_v63 = vld [vmem:[#allocation3] sm:$0xff] }
 0x28c   : > { %v486_v1 = vsel %vm484_vm8, %v481_v62, %v485_v63 }
 0x28d   : > { %487 = vst [vmem:[#allocation3] sm:$0xff] %v486_v1 }
 0x294   : > { %v490_v0 = vld [vmem:[#allocation3] sm:$0x80] }
 0x295   : > { %v491_v2 = vsel %vm489_vm13, 0, %v490_v0 }
 0x296   : > { %492 = vst [vmem:[#allocation3] sm:$0x80] %v491_v2 }
 0x29d   : > { %v499_v3 = vld [vmem:[#allocation3] sm:$0xff] }
 0x29e   : > { %625 = vmatmul.mubr.bf16.vlgmr.msra.gmra.mrb[0].mxu1 %v499_v3 }
 0x371   : > { %v626_v5 = vpop.f32.mrb[0].mxu1 }
 0x372   : > { %v627_v6 = vadd.f32 %v785_v4, %v626_v5  ;;  %v628_v7 = vpop.f32.mrb[1].mxu1 }
 0x373   : > { %v629_v8 = vpop.f32.mrb[2].mxu1 }
 0x374   : > { %633 = vst.msk [vmem:[%s296_s13] sm:$0xff] %vm315_vm4, %v627_v6  ;;  %v630_v9 = vadd.f32 %v785_v4, %v629_v8  ;;  %v631_v10 = vpop.f32.mrb[3].mxu1 }
 0x376   : > { %634 = vst.msk [vmem:[%s296_s13 + $0x8] sm:$0xff] %vm315_vm4, %v630_v9 }
 0x377   : > { %1097 = shalt.err (!%p1094_p13)
}
 0x378   : > { %s1098_s7 = scalar_lea.hbm %s1479_s10, 256  ;;  %s1102_s26 = scalar_lea.hbm %s1530_s5, 512 }
 0x379   : > { %p1099_p9 = scmp.ne.s32.totalorder %s1479_s10, %s1098_s7  ;;  %p1103_p6 = scmp.lt.u32.totalorder %s1479_s10, %s1530_s5 }
 0x37a   : > { %p1104_p4 = scmp.lt.u32.totalorder %s1102_s26, %s1098_s7  ;;  %p1106_p3 = scmp.lt.u32.totalorder %s1098_s7, %s1479_s10 }
 0x37b   : > { %p1100_p0 = pnand %p1099_p9, %p1367_p10 }
 0x37c   : > { %p1105_p8 = por %p1104_p4, %p1103_p6 }
 0x37d   : > { %p1101_p11 = pneg %p1100_p0 }
 0x37e   : > { %p1107_p5 = por %p1106_p3, %p1105_p8 }
 0x380   : > { %p1108_p7 = pnand %p1107_p5, %p1101_p11 }
 0x382   : > { %1111 = shalt.err (!%p1108_p7)
}
 0x383   : > { %s1176_s15 = smov 128   ;;  %s1177_s30 = smov 8  }
 0x384   : > { %845 = dma.vmem_to_hbm [thread:$0]  (%p1367_p10), %s1474_s8, 256, %s1479_s10, %s636_s22, %s1176_s15, %s1176_s15, %s1177_s30  }
 0x385 PF: > { %s664_s9 = sand.u32 1, %s1146_s18   ;;  %p1550_p12 = scmp.ne.s32.totalorder %s1535_s25, 0 }
 0x386   : > { %p1551_p2 = scmp.ge.s32.totalorder %s1158_s21, 2  ;;  %s665_s12 = scalar_lea.sflag [#allocation6], %s664_s9 }
 0x388   : > { %p865_p1 = pnand %p1551_p2, %p1550_p12 }
 0x38a   : > { %1141 = dma.done.wait (!%p865_p1), %s665_s12, 256  }
 0x38b   : > { %1143 = vsyncadd (!%p865_p1), %s665_s12, 4294967040  ;;  %p20_p13 = scmp.ge.s32.totalorder %s1357_s14, 4   ;;  %s1552_s18 = smov %s1150_s19 }
 0x38c   : > { %s1553_s19 = smov %s1154_s20  ;;  %s1554_s20 = smov %s1373_s28 }
 0x38d   : > { %s1555_s21 = smov %s1357_s14  ;;  %22 = sbr.rel (!%p20_p13) target bundleno = 7 (0x7), region = 101 }
 0x394   :  { %670 = vsyncpa [#allocation5], 1 }
 0x395   :  { %672 = vsyncpa [#allocation5 + $0x1], 1 }
 0x396   :  { %673 = vsyncpa [#allocation8], 1 }
 0x397   :  { %674 = vsyncpa [#allocation11], 1 }
 0x398   :  { %675 = vsyncpa [#allocation6], 1 }
 0x399   :  { %677 = vsyncpa [#allocation6 + $0x1], 1 }

</bundles_post_ra>
